<compile_context>
chip_gen: v6e
topology: v6e:2x2x1
jax: 0.10.0
libtpu: 0.0.40
codegen_flags: <defaults>
</compile_context>

<pallas_src>
import functools

import numpy as np
import jax
import jax.numpy as jnp
from jax.experimental import pallas as pl
from jax.experimental.pallas import tpu as pltpu

EMBED_SIZE = 32
PAD_SIZE = 20
DROPOUT_P = 0.5   # matches `dropout = 0.5` in the reference

_LANES = 128
_MAX_BLOCK_ROWS = 1024  # (1024,128) f32 = 512 KiB/buffer; 4 arrays x 2 bufs ~= 4 MiB


def build_positional_encoding(pad_size: int, embed_size: int) -> jnp.ndarray:
    """Exact replica of Positional_Encoding.__init__ PE table."""
    pos = np.arange(pad_size, dtype=np.float64)[:, None]
    i = np.arange(embed_size, dtype=np.float64)[None, :]
    pe = pos / (10000.0 ** ((i // 2) * 2.0 / embed_size))
    pe[:, 0::2] = np.sin(pe[:, 0::2])
    pe[:, 1::2] = np.cos(pe[:, 1::2])
    return jnp.asarray(pe, dtype=jnp.float32)


def _pe_dropout_kernel(x_ref, pe_ref, u_ref, o_ref, *, p: float):
    # (x + pe), then inverted dropout: keep w.p. (1-p), scale kept by 1/(1-p).
    out = (x_ref[...] + pe_ref[...]) * (1.0 / (1.0 - p))
    keep = u_ref[...] >= p                      # P(u >= p) = 1 - p, tied to p
    o_ref[...] = jnp.where(keep, out, 0.0).astype(o_ref.dtype)


def _pe_add_kernel(x_ref, pe_ref, o_ref):
    # Eval-mode path: dropout is identity.
    o_ref[...] = (x_ref[...] + pe_ref[...]).astype(o_ref.dtype)


def _round_up(x: int, m: int) -> int:
    return ((x + m - 1) // m) * m


def positional_encoding_forward(x: jnp.ndarray, pe: jnp.ndarray, key,
                                *, p: float = DROPOUT_P,
                                training: bool = True) -> jnp.ndarray:
    B, S, E = x.shape
    assert pe.shape == (S, E)
    total = B * S * E

    # Lane-dense layout: flatten everything to (rows, 128), pad rows so the
    # row block divides evenly and is a multiple of 8 sublanes.
    rows = pl.cdiv(total, _LANES)
    block_rows = min(_MAX_BLOCK_ROWS, _round_up(rows, 8))
    padded_rows = _round_up(rows, block_rows)
    padded_total = padded_rows * _LANES
    pad = padded_total - total

    x_flat = x.reshape(-1)
    pe_flat = jnp.broadcast_to(pe[None, :, :], (B, S, E)).reshape(-1)
    if pad:
        x_flat = jnp.pad(x_flat, (0, pad))
        pe_flat = jnp.pad(pe_flat, (0, pad))
    x2 = x_flat.reshape(padded_rows, _LANES)
    pe2 = pe_flat.reshape(padded_rows, _LANES)

    grid = (padded_rows // block_rows,)
    blk = pl.BlockSpec((block_rows, _LANES), lambda i: (i, 0))
    params = pltpu.CompilerParams(dimension_semantics=("parallel",))
    out_shape = jax.ShapeDtypeStruct((padded_rows, _LANES), x.dtype)

    apply_dropout = training and p > 0.0
    if apply_dropout:
        # Dropout uniforms generated host-side with jax.random (no in-kernel
        # HW PRNG -> works both compiled on TPU and in interpret mode).
        u2 = jax.random.uniform(key, (padded_rows, _LANES), dtype=jnp.float32)
        out2 = pl.pallas_call(
            functools.partial(_pe_dropout_kernel, p=p),
            out_shape=out_shape,
            grid_spec=pl.GridSpec(grid=grid, in_specs=[blk, blk, blk],
                                  out_specs=blk),
            compiler_params=params,
        )(x2, pe2, u2)
    else:
        out2 = pl.pallas_call(
            _pe_add_kernel,
            out_shape=out_shape,
            grid_spec=pl.GridSpec(grid=grid, in_specs=[blk, blk],
                                  out_specs=blk),
            compiler_params=params,
        )(x2, pe2)

    return out2.reshape(-1)[:total].reshape(B, S, E)


if __name__ == "__main__":
    key = jax.random.PRNGKey(0)
    kx, kd = jax.random.split(key)
    B = 2
    x = jax.random.normal(kx, (B, PAD_SIZE, EMBED_SIZE), dtype=jnp.float32)

    pe = build_positional_encoding(PAD_SIZE, EMBED_SIZE)

    # Training path (dropout applied).
    out = positional_encoding_forward(x, pe, kd, training=True)
    out = jax.block_until_ready(out)

    ref = np.asarray((x + pe[None, :, :]) * (1.0 / (1.0 - DROPOUT_P)))
    out_np = np.asarray(out)
    assert out_np.shape == (B, PAD_SIZE, EMBED_SIZE)
    ok = np.all(np.isclose(out_np, 0.0, atol=1e-6)
                | np.isclose(out_np, ref, rtol=1e-5, atol=1e-5))
    assert ok, "dropout output is neither zero nor scaled (x + pe)"

    # Eval path (dropout is identity), exact check.
    out_eval = jax.block_until_ready(
        positional_encoding_forward(x, pe, kd, training=False))
    ref_eval = np.asarray(x + pe[None, :, :])
    assert np.allclose(np.asarray(out_eval), ref_eval, rtol=1e-5, atol=1e-6)

    print("KERNEL_OK")
</pallas_src>

<mosaic_0001>
module attributes {stable_mosaic.version = 11 : i64} {
  func.func @_pe_dropout_kernel(%arg0: i32, %arg1: memref<16x128xf32, #tpu.memory_space<vmem>>, %arg2: memref<16x128xf32, #tpu.memory_space<vmem>>, %arg3: memref<16x128xf32, #tpu.memory_space<vmem>>, %arg4: memref<16x128xf32, #tpu.memory_space<vmem>>) attributes {dimension_semantics = [#tpu.dimension_semantics<parallel>], iteration_bounds = array<i64: 1>, scalar_prefetch = 0 : i64, scratch_operands = 0 : i64, tpu.core_type = #tpu.core_type<tc>, window_params = [{transform_indices = @transform_0, window_bounds = array<i64: 16, 128>}, {transform_indices = @transform_1, window_bounds = array<i64: 16, 128>}, {transform_indices = @transform_2, window_bounds = array<i64: 16, 128>}, {transform_indices = @transform_3, window_bounds = array<i64: 16, 128>}]} {
    %c0 = arith.constant 0 : index
    %c0_0 = arith.constant 0 : index
    %0 = vector.load %arg1[%c0, %c0_0] : memref<16x128xf32, #tpu.memory_space<vmem>>, vector<16x128xf32>
    %c0_1 = arith.constant 0 : index
    %c0_2 = arith.constant 0 : index
    %1 = vector.load %arg2[%c0_1, %c0_2] : memref<16x128xf32, #tpu.memory_space<vmem>>, vector<16x128xf32>
    %2 = arith.addf %0, %1 : vector<16x128xf32>
    %cst = arith.constant 2.000000e+00 : f32
    %3 = vector.broadcast %cst : f32 to vector<16x128xf32>
    %4 = arith.mulf %2, %3 : vector<16x128xf32>
    %c0_3 = arith.constant 0 : index
    %c0_4 = arith.constant 0 : index
    %5 = vector.load %arg3[%c0_3, %c0_4] : memref<16x128xf32, #tpu.memory_space<vmem>>, vector<16x128xf32>
    %cst_5 = arith.constant 5.000000e-01 : f32
    %6 = vector.broadcast %cst_5 : f32 to vector<16x128xf32>
    %7 = arith.cmpf oge, %5, %6 : vector<16x128xf32>
    %cst_6 = arith.constant 0.000000e+00 : f32
    %8 = vector.broadcast %cst_6 : f32 to vector<16x128xf32>
    %9 = arith.select %7, %4, %8 : vector<16x128xi1>, vector<16x128xf32>
    %c0_7 = arith.constant 0 : index
    %c0_8 = arith.constant 0 : index
    %10 = vector.load %arg4[%c0_7, %c0_8] : memref<16x128xf32, #tpu.memory_space<vmem>>, vector<16x128xf32>
    tpu.vector_store %arg4[%c0_7, %c0_8], %9 {strides = array<i32>} : memref<16x128xf32, #tpu.memory_space<vmem>>, vector<16x128xf32>,
    return
  }
  func.func @transform_0(%arg0: i32) -> (i32, i32) {
    %c0_i32 = arith.constant 0 : i32
    %c0_i32_0 = arith.constant 0 : i32
    return %arg0, %c0_i32 : i32, i32
  }
  func.func @transform_1(%arg0: i32) -> (i32, i32) {
    %c0_i32 = arith.constant 0 : i32
    %c0_i32_0 = arith.constant 0 : i32
    return %arg0, %c0_i32 : i32, i32
  }
  func.func @transform_2(%arg0: i32) -> (i32, i32) {
    %c0_i32 = arith.constant 0 : i32
    %c0_i32_0 = arith.constant 0 : i32
    return %arg0, %c0_i32 : i32, i32
  }
  func.func @transform_3(%arg0: i32) -> (i32, i32) {
    %c0_i32 = arith.constant 0 : i32
    %c0_i32_0 = arith.constant 0 : i32
    return %arg0, %c0_i32 : i32, i32
  }
}

</mosaic_0001>

<bundles_post_ra>
// kernel: tpu_custom_call.1
= control target key start
LH: loop header
LB: loop body
LE: loop exit
PB: predicated region body
PF: predicated region fallthrough
CT: control target
= control target key end

     0   :  { %8 = vsyncpa [#allocation3], 0  ;;  %s232_s0 = inlined_call_operand.hbm [shape: f32[16,128], index: 0, kind: input, shape index: {}]   ;;  %s233_s1 = inlined_call_operand.hbm [shape: f32[16,128], index: 1, kind: input, shape index: {}]   ;;  %s234_s2 = inlined_call_operand.hbm [shape: f32[16,128], index: 2, kind: input, shape index: {}]   ;;  %s235_s3 = inlined_call_operand.hbm [shape: f32[16,128], index: 3, kind: output, shape index: {}]  }
   0x1   :  { %9 = vsyncpa [#allocation6], 0 }
   0x2   :  { %10 = vsyncpa [#allocation4], 0  ;;  %s182_s12 = smov [#allocation5]   ;;  %s183_s14 = smov [#allocation2]  }
   0x3   :  { %s28_s13 = sshll.u32 %s182_s12, 4  ;;  %s16_s15 = sshll.u32 %s183_s14, 4  ;;  %s29_s13 = int_to_ptr.vmem [resolvable:$true] %s28_s13  ;;  %s17_s15 = int_to_ptr.vmem [resolvable:$true] %s16_s15 }
   0x4   :  { %s104_s16 = scalar_lea.vmem %s29_s13, 256  ;;  %p109_p1 = scmp.lt.s32.totalorder %s29_s13, %s29_s13 }
   0x5   :  { %p105_p0 = scmp.ne.s32.totalorder %s29_s13, %s104_s16  ;;  %p110_p2 = scmp.lt.s32.totalorder %s104_s16, %s104_s16 }
   0x7   :  { %p111_p3 = por %p110_p2, %p109_p1 }
   0x9   :  { %p112_p4 = pnand %p111_p3, %p105_p0 }
   0xb   :  { %115 = shalt.err (!%p112_p4)
}
   0xc   :  { %s184_s17 = smov 128   ;;  %s185_s18 = smov 8  }
   0xd   :  { %34 = dma.hbm_to_vmem [thread:$0]  %s233_s1, 256, %s29_s13, [#allocation6], %s184_s17, %s184_s17, %s185_s18  }
   0xe   :  { %s124_s21 = scalar_lea.vmem %s17_s15, 256  ;;  %p129_p6 = scmp.lt.s32.totalorder %s17_s15, %s17_s15 }
   0xf   :  { %p125_p5 = scmp.ne.s32.totalorder %s17_s15, %s124_s21  ;;  %p130_p7 = scmp.lt.s32.totalorder %s124_s21, %s124_s21 }
  0x11   :  { %p131_p8 = por %p130_p7, %p129_p6 }
  0x13   :  { %p132_p9 = pnand %p131_p8, %p125_p5 }
  0x15   :  { %135 = shalt.err (!%p132_p9)
}
  0x16   :  { %22 = dma.hbm_to_vmem [thread:$0]  %s232_s0, 256, %s17_s15, [#allocation3], %s184_s17, %s184_s17, %s185_s18  }
  0x17   :  { %s186_s24 = smov [#allocation7]  }
  0x18   :  { %s40_s25 = sshll.u32 %s186_s24, 4  ;;  %s41_s25 = int_to_ptr.vmem [resolvable:$true] %s40_s25 }
  0x19   :  { %s144_s26 = scalar_lea.vmem %s41_s25, 256  ;;  %p149_p11 = scmp.lt.s32.totalorder %s41_s25, %s41_s25 }
  0x1a   :  { %p145_p10 = scmp.ne.s32.totalorder %s41_s25, %s144_s26  ;;  %p150_p12 = scmp.lt.s32.totalorder %s144_s26, %s144_s26 }
  0x1c   :  { %p151_p13 = por %p150_p12, %p149_p11 }
  0x1e   :  { %p152_p0 = pnand %p151_p13, %p145_p10 }
  0x20   :  { %155 = shalt.err (!%p152_p0)
}
  0x21   :  { %46 = dma.hbm_to_vmem [thread:$0]  %s234_s2, 256, %s41_s25, [#allocation6], %s184_s17, %s184_s17, %s185_s18  }
  0x22   :  { %176 = dma.done.wait [#allocation3], 256  }
  0x23   :  { %177 = vsyncadd [#allocation3], 4294967040 }
  0x24   :  { %178 = dma.done.wait [#allocation6], 512  }
  0x25   :  { %179 = vsyncadd [#allocation6], 4294966784  ;;  %v56_v0 = vld [vmem:[#allocation2] sm:$0xff]  ;;  %v58_v1 = vld [vmem:[#allocation5] sm:$0xff]  ;;  %s187_s0 = smov [#allocation8]  }
  0x26   :  { %v64_v2 = vld [vmem:[#allocation7] sm:$0xff]  ;;  %v60_v3 = vadd.f32 %v58_v1, %v56_v0  ;;  %v57_v4 = vld [vmem:[#allocation2 + $0x8] sm:$0xff]  ;;  %v59_v5 = vld [vmem:[#allocation5 + $0x8] sm:$0xff]  ;;  %s77_s28 = sshll.u32 %s187_s0, 4  ;;  %s78_s28 = int_to_ptr.vmem [resolvable:$true] %s77_s28 }
  0x27   :  { %v65_v6 = vld [vmem:[#allocation7 + $0x8] sm:$0xff]  ;;  %vm66_vm0 = vcmp.ge.f32.partialorder %v64_v2, 0.5  ;;  %v61_v7 = vadd.f32 %v59_v5, %v57_v4  ;;  %s156_s2 = scalar_lea.vmem %s78_s28, 256  ;;  %p161_p2 = scmp.lt.s32.totalorder %s78_s28, %s78_s28 }
  0x28   :  { %v62_v8 = vmul.f32 2.0, %v60_v3  ;;  %vm67_vm1 = vcmp.ge.f32.partialorder %v65_v6, 0.5  ;;  %p157_p1 = scmp.ne.s32.totalorder %s78_s28, %s156_s2  ;;  %p162_p3 = scmp.lt.s32.totalorder %s156_s2, %s156_s2 }
  0x29   :  { %v63_v9 = vmul.f32 2.0, %v61_v7 }
  0x2a   :  { %v68_v10 = vsel %vm66_vm0, %v62_v8, 0.0  ;;  %p163_p4 = por %p162_p3, %p161_p2 }
  0x2b   :  { %70 = vst [vmem:[#allocation8] sm:$0xff] %v68_v10  ;;  %v69_v11 = vsel %vm67_vm1, %v63_v9, 0.0 }
  0x2c   :  { %71 = vst [vmem:[#allocation8 + $0x8] sm:$0xff] %v69_v11  ;;  %p164_p5 = pnand %p163_p4, %p157_p1 }
  0x2e   :  { %167 = shalt.err (!%p164_p5)
}
  0x2f   :  { %83 = dma.vmem_to_hbm [thread:$0]  %s78_s28, 256, %s235_s3, [#allocation4], %s184_s17, %s184_s17, %s185_s18  }
  0x30   :  { %180 = dma.done.wait [#allocation4], 256  }
  0x31   :  { %181 = vsyncadd [#allocation4], 4294967040 }
  0x32   :  { %87 = vsyncpa [#allocation3], 1 }
  0x33   :  { %88 = vsyncpa [#allocation6], 1 }
  0x34   :  { %89 = vsyncpa [#allocation4], 1 }

</bundles_post_ra>
